<compile_context>
chip_gen: v7x
topology: tpu7x:2x2x1
jax: 0.10.0
libtpu: 0.0.40
codegen_flags: <defaults>
</compile_context>

<pallas_src>
import jax
import jax.numpy as jnp
from jax import lax
from jax.experimental import pallas as pl
from jax.experimental.pallas import tpu as pltpu


# ----------------------------- Pallas kernel ------------------------------ #

def _matmul_bias_silu_kernel(w_ref, a_ref, b_ref, o_ref):
    # [Cout, K] @ [K, tm] on the MXU, f32 accumulation. Lanes = tm (dense).
    acc = jnp.dot(w_ref[...], a_ref[...], preferred_element_type=jnp.float32)
    y = acc + b_ref[...]                                   # bias [Cout,1] -> lanes
    o_ref[...] = (y * jax.nn.sigmoid(y)).astype(o_ref.dtype)   # SiLU (EUP)


def fused_conv_t(w_mat, a_t, bias, out_dtype=jnp.float32, tm=None):
    """SiLU(w_mat @ a_t + bias[:, None]) with the column (M) axis on lanes.

    w_mat: [Cout, K]  (BN scale already folded in)
    a_t  : [K, M]     (transposed im2col; M = N*Ho*Wo)
    bias : [Cout]
    """
    Cout, K = w_mat.shape
    Kb, M = a_t.shape
    assert K == Kb
    if tm is None:
        # >= 2 grid steps so both v7x TensorCores get work; lane-multiple tiles;
        # cap keeps double-buffered tiles far below the v7x 64 MiB VMEM.
        tm = min(2048, max(128, pl.cdiv(pl.cdiv(M, 2), 128) * 128))
    Mp = pl.cdiv(M, tm) * tm
    a_p = jnp.pad(a_t.astype(jnp.bfloat16), ((0, 0), (0, Mp - M)))
    w_b = w_mat.astype(jnp.bfloat16)
    bias2 = bias.reshape(Cout, 1).astype(jnp.float32)

    out = pl.pallas_call(
        _matmul_bias_silu_kernel,
        out_shape=jax.ShapeDtypeStruct((Cout, Mp), out_dtype),
        grid=(Mp // tm,),
        in_specs=[
            pl.BlockSpec((Cout, K), lambda i: (0, 0)),
            pl.BlockSpec((K, tm), lambda i: (0, i)),
            pl.BlockSpec((Cout, 1), lambda i: (0, 0)),
        ],
        out_specs=pl.BlockSpec((Cout, tm), lambda i: (0, i)),
        compiler_params=pltpu.CompilerParams(dimension_semantics=("parallel",)),
    )(w_b, a_p, bias2)
    return out[:, :M]


# ------------------------------- glue (JAX) -------------------------------- #

def _branch_cols_t(xp, kh, kw, s):
    """Padded NCHW input -> transposed im2col block [C*kh*kw, N*Ho*Wo].

    Row index = cin*(kh*kw) + tap, matching OIHW weight flattening.
    Columns iterate (N, Ho, Wo) row-major.
    """
    # TODO(synk): at production shapes, pull the tap gathering into the kernel
    # (manual DMA of an input tile + kh*kw shifted slices) to avoid the im2col
    # HBM inflation; at these toy shapes the glue is negligible.
    N, C, Hp, Wp = xp.shape
    Ho = (Hp - kh) // s + 1
    Wo = (Wp - kw) // s + 1
    taps = []
    for i in range(kh):
        for j in range(kw):
            taps.append(xp[:, :, i:i + s * (Ho - 1) + 1:s,
                           j:j + s * (Wo - 1) + 1:s])
    p = jnp.stack(taps, axis=2)               # [N, C, T, Ho, Wo]
    p = jnp.transpose(p, (1, 2, 0, 3, 4))     # [C, T, N, Ho, Wo]  (tiny glue op)
    return p.reshape(C * kh * kw, N * Ho * Wo), N, Ho, Wo


def _stage1_weights(params):
    """Block-diagonal, BN-folded weight for the fused 4-branch matmul."""
    cq, c1, kh, kw = params['w_cw'].shape     # (cq, c1, 1, k)
    k = max(kh, kw)
    kb = c1 * k
    w_cw = params['w_cw'].reshape(cq, kb) * params['cw_scale'][:, None]
    w_ch = params['w_ch'].reshape(cq, kb) * params['ch_scale'][:, None]
    W = jnp.zeros((4 * cq, 4 * kb), jnp.float32)
    W = W.at[0 * cq:1 * cq, 0 * kb:1 * kb].set(w_cw)   # yw0
    W = W.at[1 * cq:2 * cq, 1 * kb:2 * kb].set(w_cw)   # yw1
    W = W.at[2 * cq:3 * cq, 2 * kb:3 * kb].set(w_ch)   # yh0
    W = W.at[3 * cq:4 * cq, 3 * kb:4 * kb].set(w_ch)   # yh1
    bias = jnp.concatenate([params['cw_bias'], params['cw_bias'],
                            params['ch_bias'], params['ch_bias']])
    return W, bias


def pinwheel_forward(x, params, k, s):
    """Pinwheel_shapedConv.forward. x: [N, c1, H, W] -> [N, c2, H//s, W//s]."""
    # ZeroPad2d order is (left, right, top, bottom); jnp.pad: H=(top,bot), W=(left,right)
    x0 = jnp.pad(x, ((0, 0), (0, 0), (1, 0), (k, 0)))   # p[0] = (k, 0, 1, 0)
    x1 = jnp.pad(x, ((0, 0), (0, 0), (0, 1), (0, k)))   # p[1] = (0, k, 0, 1)
    x2 = jnp.pad(x, ((0, 0), (0, 0), (k, 0), (0, 1)))   # p[2] = (0, 1, k, 0)
    x3 = jnp.pad(x, ((0, 0), (0, 0), (0, k), (1, 0)))   # p[3] = (1, 0, 0, k)

    a0, N, Ho, Wo = _branch_cols_t(x0, 1, k, s)
    a1 = _branch_cols_t(x1, 1, k, s)[0]
    a2 = _branch_cols_t(x2, k, 1, s)[0]
    a3 = _branch_cols_t(x3, k, 1, s)[0]
    a_t = jnp.concatenate([a0, a1, a2, a3], axis=0)      # [4*c1*k, N*Ho*Wo]

    W1, b1 = _stage1_weights(params)
    c2 = W1.shape[0]
    # One pallas_call covers all four branches; its output IS the channel concat.
    ycat = fused_conv_t(W1, a_t, b1, out_dtype=jnp.bfloat16)   # [c2, N*Ho*Wo]
    ycat = ycat.reshape(c2, N, Ho, Wo)

    # 2x2 "cat" conv (stride 1, p=0) directly on the channel-major intermediate.
    Ho2, Wo2 = Ho - 1, Wo - 1
    taps = [ycat[:, :, i:i + Ho2, j:j + Wo2] for i in range(2) for j in range(2)]
    a2_t = jnp.stack(taps, axis=1).reshape(c2 * 4, N * Ho2 * Wo2)   # [c2*4, M2]

    W2 = params['w_cat'].reshape(c2, c2 * 4) * params['cat_scale'][:, None]
    y = fused_conv_t(W2, a2_t, params['cat_bias'], out_dtype=jnp.float32)
    y = y.reshape(c2, N, Ho2, Wo2)
    return jnp.transpose(y, (1, 0, 2, 3))    # single layout conversion -> NCHW


# --------------------------- parameter init -------------------------------- #

def _bn_fold(key, n):
    k1, k2, k3, k4 = jax.random.split(key, 4)
    gamma = 1.0 + 0.1 * jax.random.normal(k1, (n,), jnp.float32)
    beta = 0.1 * jax.random.normal(k2, (n,), jnp.float32)
    mean = 0.1 * jax.random.normal(k3, (n,), jnp.float32)
    var = 0.9 + 0.2 * jax.random.uniform(k4, (n,), jnp.float32)
    scale = gamma / jnp.sqrt(var + 1e-5)
    bias = beta - mean * scale
    return scale, bias


def init_params(key, c1, c2, k):
    cq = c2 // 4
    k_cw, k_ch, k_cat, k_b1, k_b2, k_b3 = jax.random.split(key, 6)
    params = {
        'w_cw':  0.2 * jax.random.normal(k_cw,  (cq, c1, 1, k), jnp.float32),
        'w_ch':  0.2 * jax.random.normal(k_ch,  (cq, c1, k, 1), jnp.float32),
        'w_cat': 0.2 * jax.random.normal(k_cat, (c2, c2, 2, 2), jnp.float32),
    }
    params['cw_scale'],  params['cw_bias']  = _bn_fold(k_b1, cq)
    params['ch_scale'],  params['ch_bias']  = _bn_fold(k_b2, cq)
    params['cat_scale'], params['cat_bias'] = _bn_fold(k_b3, c2)
    return params


# --------------------------- pure-JAX reference ----------------------------- #

def _ref_block(x, w, scale, bias, stride):
    y = lax.conv_general_dilated(x, w, (stride, stride), 'VALID',
                                 dimension_numbers=('NCHW', 'OIHW', 'NCHW'))
    y = y * scale[None, :, None, None] + bias[None, :, None, None]
    return y * jax.nn.sigmoid(y)


def ref_forward(x, params, k, s):
    x0 = jnp.pad(x, ((0, 0), (0, 0), (1, 0), (k, 0)))
    x1 = jnp.pad(x, ((0, 0), (0, 0), (0, 1), (0, k)))
    x2 = jnp.pad(x, ((0, 0), (0, 0), (k, 0), (0, 1)))
    x3 = jnp.pad(x, ((0, 0), (0, 0), (0, k), (1, 0)))
    yw0 = _ref_block(x0, params['w_cw'], params['cw_scale'], params['cw_bias'], s)
    yw1 = _ref_block(x1, params['w_cw'], params['cw_scale'], params['cw_bias'], s)
    yh0 = _ref_block(x2, params['w_ch'], params['ch_scale'], params['ch_bias'], s)
    yh1 = _ref_block(x3, params['w_ch'], params['ch_scale'], params['ch_bias'], s)
    ycat = jnp.concatenate([yw0, yw1, yh0, yh1], axis=1)
    return _ref_block(ycat, params['w_cat'], params['cat_scale'], params['cat_bias'], 1)


# ---------------------------------- main ------------------------------------ #

if __name__ == "__main__":
    N, c1, c2, H, W, k, s = 2, 4, 16, 16, 16, 3, 1
    key = jax.random.PRNGKey(0)
    kx, kp = jax.random.split(key)
    x = jax.random.normal(kx, (N, c1, H, W), jnp.float32)
    params = init_params(kp, c1, c2, k)

    fwd = jax.jit(pinwheel_forward, static_argnums=(2, 3))
    out = jax.block_until_ready(fwd(x, params, k, s))
    ref = jax.block_until_ready(ref_forward(x, params, k, s))

    assert out.shape == (N, c2, H // s, W // s), out.shape
    # bf16 MXU operands (f32 accumulation) -> loosened tolerance vs f32 reference.
    if not jnp.allclose(out, ref, rtol=5e-2, atol=5e-2):
        raise AssertionError(
            f"mismatch vs reference, max abs err = {float(jnp.max(jnp.abs(out - ref)))}")
    print("KERNEL_OK")
</pallas_src>

<mosaic_0001>
module attributes {stable_mosaic.version = 11 : i64} {
  func.func @_matmul_bias_silu_kernel(%arg0: i32, %arg1: memref<16x48xbf16, #tpu.memory_space<vmem>>, %arg2: memref<48x384xbf16, #tpu.memory_space<vmem>>, %arg3: memref<16x1xf32, #tpu.memory_space<vmem>>, %arg4: memref<16x384xbf16, #tpu.memory_space<vmem>>) attributes {dimension_semantics = [#tpu.dimension_semantics<parallel>], iteration_bounds = array<i64: 2>, scalar_prefetch = 0 : i64, scratch_operands = 0 : i64, tpu.core_type = #tpu.core_type<tc>, window_params = [{pipeline_mode = #tpu.pipeline_mode<synchronous>, transform_indices = @transform_0, window_bounds = array<i64: 16, 48>}, {transform_indices = @transform_1, window_bounds = array<i64: 48, 384>}, {pipeline_mode = #tpu.pipeline_mode<synchronous>, transform_indices = @transform_2, window_bounds = array<i64: 16, 1>}, {transform_indices = @transform_3, window_bounds = array<i64: 16, 384>}]} {
    %c0 = arith.constant 0 : index
    %c0_0 = arith.constant 0 : index
    %0 = vector.load %arg1[%c0, %c0_0] : memref<16x48xbf16, #tpu.memory_space<vmem>>, vector<16x48xbf16>
    %c0_1 = arith.constant 0 : index
    %c0_2 = arith.constant 0 : index
    %1 = vector.load %arg2[%c0_1, %c0_2] : memref<48x384xbf16, #tpu.memory_space<vmem>>, vector<48x384xbf16>
    %cst = arith.constant dense<0.000000e+00> : vector<16x384xf32>
    %2 = tpu.matmul %0, %1, %cst {dimension_numbers = #tpu.dot_dimension_numbers<[1], [0], [0], [1], [0, 0, 1, 1], [], []>} : vector<16x48xbf16>, vector<48x384xbf16>, vector<16x384xf32> -> vector<16x384xf32>
    %c0_3 = arith.constant 0 : index
    %c0_4 = arith.constant 0 : index
    %3 = vector.load %arg3[%c0_3, %c0_4] : memref<16x1xf32, #tpu.memory_space<vmem>>, vector<16x1xf32>
    %4 = vector.broadcast %3 : vector<16x1xf32> to vector<16x384xf32>
    %5 = arith.addf %2, %4 : vector<16x384xf32>
    %6 = arith.negf %5 : vector<16x384xf32>
    %7 = math.exp %6 : vector<16x384xf32>
    %cst_5 = arith.constant 1.000000e+00 : f32
    %8 = vector.broadcast %cst_5 : f32 to vector<16x384xf32>
    %9 = arith.addf %8, %7 : vector<16x384xf32>
    %10 = arith.divf %8, %9 : vector<16x384xf32>
    %11 = arith.mulf %5, %10 : vector<16x384xf32>
    %12 = arith.truncf %11 : vector<16x384xf32> to vector<16x384xbf16>
    %c0_6 = arith.constant 0 : index
    %c0_7 = arith.constant 0 : index
    %13 = vector.load %arg4[%c0_6, %c0_7] : memref<16x384xbf16, #tpu.memory_space<vmem>>, vector<16x384xbf16>
    tpu.vector_store %arg4[%c0_6, %c0_7], %12 {strides = array<i32>} : memref<16x384xbf16, #tpu.memory_space<vmem>>, vector<16x384xbf16>,
    return
  }
  func.func @transform_0(%arg0: i32) -> (i32, i32) {
    %c0_i32 = arith.constant 0 : i32
    %c0_i32_0 = arith.constant 0 : i32
    %c0_i32_1 = arith.constant 0 : i32
    return %c0_i32, %c0_i32_0 : i32, i32
  }
  func.func @transform_1(%arg0: i32) -> (i32, i32) {
    %c0_i32 = arith.constant 0 : i32
    %c0_i32_0 = arith.constant 0 : i32
    return %c0_i32, %arg0 : i32, i32
  }
  func.func @transform_2(%arg0: i32) -> (i32, i32) {
    %c0_i32 = arith.constant 0 : i32
    %c0_i32_0 = arith.constant 0 : i32
    %c0_i32_1 = arith.constant 0 : i32
    return %c0_i32, %c0_i32_0 : i32, i32
  }
  func.func @transform_3(%arg0: i32) -> (i32, i32) {
    %c0_i32 = arith.constant 0 : i32
    %c0_i32_0 = arith.constant 0 : i32
    return %c0_i32, %arg0 : i32, i32
  }
}

module attributes {stable_mosaic.version = 11 : i64} {
  func.func @_matmul_bias_silu_kernel(%arg0: i32, %arg1: memref<16x64xbf16, #tpu.memory_space<vmem>>, %arg2: memref<64x256xbf16, #tpu.memory_space<vmem>>, %arg3: memref<16x1xf32, #tpu.memory_space<vmem>>, %arg4: memref<16x256xf32, #tpu.memory_space<vmem>>) attributes {dimension_semantics = [#tpu.dimension_semantics<parallel>], iteration_bounds = array<i64: 2>, scalar_prefetch = 0 : i64, scratch_operands = 0 : i64, tpu.core_type = #tpu.core_type<tc>, window_params = [{pipeline_mode = #tpu.pipeline_mode<synchronous>, transform_indices = @transform_0, window_bounds = array<i64: 16, 64>}, {transform_indices = @transform_1, window_bounds = array<i64: 64, 256>}, {pipeline_mode = #tpu.pipeline_mode<synchronous>, transform_indices = @transform_2, window_bounds = array<i64: 16, 1>}, {transform_indices = @transform_3, window_bounds = array<i64: 16, 256>}]} {
    %c0 = arith.constant 0 : index
    %c0_0 = arith.constant 0 : index
    %0 = vector.load %arg1[%c0, %c0_0] : memref<16x64xbf16, #tpu.memory_space<vmem>>, vector<16x64xbf16>
    %c0_1 = arith.constant 0 : index
    %c0_2 = arith.constant 0 : index
    %1 = vector.load %arg2[%c0_1, %c0_2] : memref<64x256xbf16, #tpu.memory_space<vmem>>, vector<64x256xbf16>
    %cst = arith.constant dense<0.000000e+00> : vector<16x256xf32>
    %2 = tpu.matmul %0, %1, %cst {dimension_numbers = #tpu.dot_dimension_numbers<[1], [0], [0], [1], [0, 0, 1, 1], [], []>} : vector<16x64xbf16>, vector<64x256xbf16>, vector<16x256xf32> -> vector<16x256xf32>
    %c0_3 = arith.constant 0 : index
    %c0_4 = arith.constant 0 : index
    %3 = vector.load %arg3[%c0_3, %c0_4] : memref<16x1xf32, #tpu.memory_space<vmem>>, vector<16x1xf32>
    %4 = vector.broadcast %3 : vector<16x1xf32> to vector<16x256xf32>
    %5 = arith.addf %2, %4 : vector<16x256xf32>
    %6 = arith.negf %5 : vector<16x256xf32>
    %7 = math.exp %6 : vector<16x256xf32>
    %cst_5 = arith.constant 1.000000e+00 : f32
    %8 = vector.broadcast %cst_5 : f32 to vector<16x256xf32>
    %9 = arith.addf %8, %7 : vector<16x256xf32>
    %10 = arith.divf %8, %9 : vector<16x256xf32>
    %11 = arith.mulf %5, %10 : vector<16x256xf32>
    %c0_6 = arith.constant 0 : index
    %c0_7 = arith.constant 0 : index
    %12 = vector.load %arg4[%c0_6, %c0_7] : memref<16x256xf32, #tpu.memory_space<vmem>>, vector<16x256xf32>
    tpu.vector_store %arg4[%c0_6, %c0_7], %11 {strides = array<i32>} : memref<16x256xf32, #tpu.memory_space<vmem>>, vector<16x256xf32>,
    return
  }
  func.func @transform_0(%arg0: i32) -> (i32, i32) {
    %c0_i32 = arith.constant 0 : i32
    %c0_i32_0 = arith.constant 0 : i32
    %c0_i32_1 = arith.constant 0 : i32
    return %c0_i32, %c0_i32_0 : i32, i32
  }
  func.func @transform_1(%arg0: i32) -> (i32, i32) {
    %c0_i32 = arith.constant 0 : i32
    %c0_i32_0 = arith.constant 0 : i32
    return %c0_i32, %arg0 : i32, i32
  }
  func.func @transform_2(%arg0: i32) -> (i32, i32) {
    %c0_i32 = arith.constant 0 : i32
    %c0_i32_0 = arith.constant 0 : i32
    %c0_i32_1 = arith.constant 0 : i32
    return %c0_i32, %c0_i32_0 : i32, i32
  }
  func.func @transform_3(%arg0: i32) -> (i32, i32) {
    %c0_i32 = arith.constant 0 : i32
    %c0_i32_0 = arith.constant 0 : i32
    return %c0_i32, %arg0 : i32, i32
  }
}

</mosaic_0001>

<bundles_post_ra>
// kernel: pinwheel_forward.2
= control target key start
LH: loop header
LB: loop body
LE: loop exit
PB: predicated region body
PF: predicated region fallthrough
CT: control target
= control target key end

     0   :  { %s740_s12 = smov 0   ;;  %s742_s13 = smov 0   ;;  %s813_s0 = inlined_call_operand.vmem [shape: bf16[16,48], index: 0, kind: input, shape index: {}]   ;;  %s814_s1 = inlined_call_operand.vmem [shape: bf16[48,768], index: 1, kind: input, shape index: {}]   ;;  %s815_s2 = inlined_call_operand.vmem [shape: f32[16,1], index: 2, kind: input, shape index: {}]   ;;  %s816_s3 = inlined_call_operand.vmem [shape: bf16[16,768], index: 3, kind: output, shape index: {}]  }
   0x1   :  { %s744_s14 = smov 0  }
   0x2 LB: > { %s558_s15 = sadd.s32 4294967295, %s715_s14   ;;  %s757_s16 = sadd.s32 1, %s715_s14   ;;  %s715_s14 = sphi %s744_s14, %s820_s14   ;;  %s711_s13 = sphi %s742_s13, %s819_s13   ;;  %s707_s12 = sphi %s740_s12, %s818_s12  }
   0x3   : > { %s38_s17 = ssub.s32 %s715_s14, %s757_s16  ;;  %s41_s18 = sadd.s32 1, %s711_s13 }
   0x4   : > { %p39_p0 = scmp.eq.s32.totalorder %s38_s17, 0  ;;  %p48_p1 = scmp.ne.s32.totalorder %s711_s13, %s707_s12 }
   0x5   : > { %p49_p2 = scmp.eq.s32.totalorder %s715_s14, 0  ;;  %p99_p3 = scmp.eq.s32.totalorder %s558_s15, 1 }
   0x6   : > { %s768_s19 = scalar_select %p39_p0, %s711_s13, %s41_s18  }
   0x7   : > { %p50_p4 = por %p49_p2, %p48_p1  ;;  %p770_p5 = por %p99_p3, %p48_p1 }
   0x8   : > { %p561_p6 = scmp.ge.s32.totalorder %s715_s14, 2 }
   0xa   : > { %127 = sbr.rel (%p561_p6) target bundleno = 29 (0x1d), region = 24 }
  0x11   : > { %130 = sbr.rel (!%p50_p4) target bundleno = 29 (0x1d), region = 28  ;;  %s132_s21 = sand.u32 (%p50_p4), 1, %s711_s13  }
  0x12   : > { %s605_s22 = smul.u32 (%p50_p4), 12, %s715_s14 }
  0x13   : > { %s625_s23 = smul.u32 (%p50_p4), 72, %s132_s21 }
  0x14   : > { %s137_s26 = scalar_lea.vmem (%p50_p4), %s814_s1, %s605_s22 }
  0x15   : > { %v152_v0 = vld [vmem:[%s137_s26] sm:$0xff] (%p50_p4)  ;;  %v154_v1 = vld [vmem:[%s137_s26 + $0x18] sm:$0xff] (%p50_p4)  ;;  %v156_v2 = vld [vmem:[%s137_s26 + $0x30] sm:$0xff] (%p50_p4)  ;;  %s134_s27 = scalar_lea.vmem (%p50_p4), [#allocation2], %s625_s23 }
  0x16   : > { %153 = vst [vmem:[%s134_s27] sm:$0xff] (%p50_p4), %v152_v0  ;;  %155 = vst [vmem:[%s134_s27 + $0xc] sm:$0xff] (%p50_p4), %v154_v1  ;;  %v158_v3 = vld [vmem:[%s137_s26 + $0x48] sm:$0xff] (%p50_p4)  ;;  %v160_v4 = vld [vmem:[%s137_s26 + $0x60] sm:$0xff] (%p50_p4) }
  0x17   : > { %157 = vst [vmem:[%s134_s27 + $0x18] sm:$0xff] (%p50_p4), %v156_v2  ;;  %v162_v5 = vld [vmem:[%s137_s26 + $0x78] sm:$0xff] (%p50_p4)  ;;  %159 = vst [vmem:[%s134_s27 + $0x24] sm:$0xff] (%p50_p4), %v158_v3  ;;  %v563_v6 = vld [vmem:[%s137_s26 + $0x8] sm:$0xf] (%p50_p4) }
  0x18   : > { %161 = vst [vmem:[%s134_s27 + $0x30] sm:$0xff] %v160_v4  ;;  %163 = vst [vmem:[%s134_s27 + $0x3c] sm:$0xff] %v162_v5  ;;  %v565_v7 = vld [vmem:[%s137_s26 + $0x20] sm:$0xf]  ;;  %v567_v8 = vld [vmem:[%s137_s26 + $0x38] sm:$0xf] }
  0x19   : > { %564 = vst [vmem:[%s134_s27 + $0x8] sm:$0xf] %v563_v6  ;;  %566 = vst [vmem:[%s134_s27 + $0x14] sm:$0xf] %v565_v7  ;;  %v569_v9 = vld [vmem:[%s137_s26 + $0x50] sm:$0xf] }
  0x1a   : > { %568 = vst [vmem:[%s134_s27 + $0x20] sm:$0xf] %v567_v8  ;;  %v571_v10 = vld [vmem:[%s137_s26 + $0x68] sm:$0xf]  ;;  %v573_v11 = vld [vmem:[%s137_s26 + $0x80] sm:$0xf] }
  0x1b   : > { %570 = vst [vmem:[%s134_s27 + $0x2c] sm:$0xf] %v569_v9  ;;  %572 = vst [vmem:[%s134_s27 + $0x38] sm:$0xf] %v571_v10 }
  0x1c   : > { %574 = vst [vmem:[%s134_s27 + $0x44] sm:$0xf] %v573_v11 }
  0x1d PF: > { %p575_p7 = scmp.ge.s32.totalorder %s715_s14, 1  ;;  %p187_p8 = scmp.lt.s32.totalorder %s715_s14, 3 }
  0x1f   : > { %p188_p9 = pnand %p575_p7, %p187_p8 }
  0x20   : > { %s194_s28 = sand.u32 (!%p188_p9), 1, %s707_s12   ;;  %v717_v12 = vmov (!%p188_p9), 0.0   ;;  %vm718_vm0 = vmmov (!%p188_p9), 0   ;;  %v233_v13 = vld [vmem:[%s815_s2] sm:$0xff] (!%p188_p9)  ;;  %v719_v14 = vmov (!%p188_p9), 0   ;;  %v234_v15 = vld [vmem:[%s815_s2 + $0x8] sm:$0xff] (!%p188_p9) }
  0x21   : > { %191 = sbr.rel (%p188_p9) target bundleno = 307 (0x133), region = 54  ;;  %615 = vmatprep.subr.bf16.mxu1 (!%p188_p9), %v717_v12  ;;  %621 = vmatprep.mubr.msk.bf16.mxu1 (!%p188_p9), %vm718_vm0, %v717_v12  ;;  %v668_v25 = vld [vmem:[%s813_s0] sm:$0xff] (!%p188_p9)   ;;  %vm298_vm1 = vcmask (!%p188_p9), 392192  }
  0x22   : > { %s626_s29 = smul.u32 (!%p188_p9), 72, %s194_s28  ;;  %334 = vmatprep.mubr.bf16.mxu0 (!%p188_p9), %v719_v14  ;;  %655 = vset.pattern.permute.xlu0 (!%p188_p9), %v719_v14 }
  0x23   : > { %237 = vperm.xlu0 (!%p188_p9), %655, %v233_v13   ;;  %s627_s10 = smul.u32 (!%p188_p9), 24, %s194_s28 }
  0x24   : > { %s196_s7 = scalar_lea.vmem (!%p188_p9), [#allocation2], %s626_s29 }
  0x25   : > { %v656_v16 = vld [vmem:[%s196_s7 + $0x4] ss:$12 sps:$4 sm:$0xff] (!%p188_p9)   ;;  %v658_v17 = vld [vmem:[%s196_s7 + $0x8] ss:$12 sps:$4 sm:$0xff] (!%p188_p9)   ;;  %v659_v18 = vld [vmem:[%s196_s7] ss:$12 sps:$4 sm:$0xff] (!%p188_p9)  }
  0x26   : > { %302 = vmatprep.subr.bf16.mxu0 (!%p188_p9), %v656_v16  ;;  %616 = vmatpush3.bf16.msra.mxu1 (!%p188_p9), %v658_v17  ;;  %v660_v19 = vld [vmem:[%s196_s7 + $0x1c] ss:$12 sps:$4 sm:$0xff] (!%p188_p9)   ;;  %v662_v20 = vld [vmem:[%s196_s7 + $0x20] ss:$12 sps:$4 sm:$0xff] (!%p188_p9)   ;;  %v663_v21 = vld [vmem:[%s196_s7 + $0x18] ss:$12 sps:$4 sm:$0xff] (!%p188_p9)  }
  0x27   : > { %242 = vperm.xlu0 (!%p188_p9), %655, %v234_v15   ;;  %303 = vmatpush1.bf16.msra.mxu0 (!%p188_p9), %v659_v18  ;;  %v664_v22 = vld [vmem:[%s196_s7 + $0x34] ss:$12 sps:$4 sm:$0xff] (!%p188_p9)   ;;  %v666_v23 = vld [vmem:[%s196_s7 + $0x38] ss:$12 sps:$4 sm:$0xff] (!%p188_p9)   ;;  %v667_v24 = vld [vmem:[%s196_s7 + $0x30] ss:$12 sps:$4 sm:$0xff] (!%p188_p9)  }
  0x28   : > { %617 = vmatprep.subr.bf16.mxu1 %v717_v12  ;;  %304 = vmatprep.subr.bf16.mxu0 %v660_v19  ;;  %s215_s11 = scalar_lea.vmem [#allocation3], %s627_s10  ;;  %s610_s12 = smul.u32 (%p770_p5), 12, %s558_s15 }
  0x2a   : > { %618 = vmatpush3.bf16.msra.mxu1 %v662_v20  ;;  %s461_s21 = scalar_lea.vmem (%p770_p5), %s816_s3, %s610_s12 }
  0x2b   : > { %305 = vmatpush1.bf16.msra.mxu0 %v663_v21  ;;  %619 = vmatprep.subr.bf16.mxu1 %v717_v12 }
  0x2c   : > { %306 = vmatprep.subr.bf16.mxu0 %v664_v22 }
  0x2e   : > { %620 = vmatpush3.bf16.msra.mxu1 %v666_v23 }
  0x2f   : > { %307 = vmatpush1.bf16.msra.mxu0 %v667_v24 }
  0x31   : > { %622 = vmatmul.mubr.msk.bf16.vlgmr.msra.gmra.mrb[0].mxu1 %vm298_vm1, %v668_v25 }
  0x32   : > { %586 = vmatmul.mubr.msk.bf16.vlgmr.msra.gmra.mrb[0].mxu0 %vm298_vm1, %v668_v25 }
  0xa2   : > { %v238_v26 = vpop.permute.xlu0 %237 }
  0xa6   : > { %v243_v27 = vpop.permute.xlu0 %242 }
 0x104   : > { %v379_v28 = vpop.f32.mrb[0].mxu1 }
 0x105   : > { %v380_v29 = vadd.f32 %v379_v28, %v238_v26  ;;  %v336_v30 = vpop.f32.mrb[0].mxu0  ;;  %v623_v31 = vpop.f32.mrb[1].mxu1 }
 0x106   : > { %v337_v32 = vadd.f32 %v336_v30, %v238_v26  ;;  %v338_v33 = vpop.f32.mrb[1].mxu0  ;;  %v382_v34 = vpop.f32.mrb[2].mxu1 }
 0x107   : > { %v590_v35 = vmul.f32 -1.442695, %v380_v29  ;;  %v339_v36 = vadd.f32 %v338_v33, %v238_v26  ;;  %v383_v37 = vadd.f32 %v382_v34, %v243_v27  ;;  %v340_v38 = vpop.f32.mrb[2].mxu0  ;;  %v624_v39 = vpop.f32.mrb[3].mxu1 }
 0x108   : > { %v588_v40 = vmul.f32 -1.442695, %v337_v32  ;;  %v341_v41 = vadd.f32 %v340_v38, %v243_v27  ;;  %v342_v42 = vpop.f32.mrb[3].mxu0 }
 0x109   : > { %669 = vpow2.f32 %v590_v35  ;;  %v589_v43 = vmul.f32 -1.442695, %v339_v36  ;;  %v593_v44 = vmul.f32 -1.442695, %v383_v37  ;;  %v343_v45 = vadd.f32 %v342_v42, %v243_v27 }
 0x10a   : > { %671 = vpow2.f32 %v588_v40  ;;  %v591_v46 = vmul.f32 -1.442695, %v341_v41 }
 0x10b   : > { %673 = vpow2.f32 %v589_v43  ;;  %v592_v47 = vmul.f32 -1.442695, %v343_v45 }
 0x10c   : > { %675 = vpow2.f32 %v593_v44 }
 0x10d   : > { %677 = vpow2.f32 %v591_v46 }
 0x10e   : > { %679 = vpow2.f32 %v592_v47 }
 0x113   : > { %v670_v48 = vpop.eup %669 }
 0x114   : > { %v672_v49 = vpop.eup %671  ;;  %v406_v50 = vadd.f32 1.0, %v670_v48 }
 0x115   : > { %v674_v51 = vpop.eup %673  ;;  %v404_v52 = vadd.f32 1.0, %v672_v49 }
 0x116   : > { %v676_v53 = vpop.eup %675  ;;  %681 = vrcp.f32 %v406_v50  ;;  %v405_v54 = vadd.f32 1.0, %v674_v51 }
 0x117   : > { %v678_v55 = vpop.eup %677  ;;  %683 = vrcp.f32 %v404_v52  ;;  %v409_v56 = vadd.f32 1.0, %v676_v53 }
 0x118   : > { %v680_v57 = vpop.eup %679  ;;  %685 = vrcp.f32 %v405_v54  ;;  %v407_v58 = vadd.f32 1.0, %v678_v55 }
 0x119   : > { %687 = vrcp.f32 %v409_v56  ;;  %v408_v59 = vadd.f32 1.0, %v680_v57 }
 0x11a   : > { %689 = vrcp.f32 %v407_v58 }
 0x11b   : > { %691 = vrcp.f32 %v408_v59 }
 0x120   : > { %v682_v60 = vpop.eup %681 }
 0x121   : > { %v684_v61 = vpop.eup %683  ;;  %v424_v62 = vmul.f32 %v682_v60, %v380_v29 }
 0x122   : > { %v686_v63 = vpop.eup %685  ;;  %v422_v0 = vmul.f32 %v684_v61, %v337_v32 }
 0x123   : > { %v688_v1 = vpop.eup %687  ;;  %v607_v2 = vpack.c.bf16 %v424_v62, %v424_v62  ;;  %v423_v3 = vmul.f32 %v686_v63, %v339_v36 }
 0x124   : > { %v690_v4 = vpop.eup %689  ;;  %v427_v5 = vmul.f32 %v688_v1, %v383_v37  ;;  %458 = sbr.rel (!%p770_p5) target bundleno = 307 (0x133), region = 62 }
 0x125   : > { %v692_v6 = vpop.eup %691  ;;  %449 = vst [vmem:[%s215_s11 + $0x8] sm:$0xf] %v607_v2  ;;  %v606_v7 = vpack.c.bf16 %v423_v3, %v422_v0  ;;  %v425_v8 = vmul.f32 %v690_v4, %v341_v41 }
 0x126   : > { %v609_v9 = vpack.c.bf16 %v427_v5, %v427_v5  ;;  %v426_v10 = vmul.f32 %v692_v6, %v343_v45 }
 0x127   : > { %448 = vst [vmem:[%s215_s11] sm:$0xff] %v606_v7 }
 0x128   : > { %451 = vst [vmem:[%s215_s11 + $0x14] sm:$0xf] %v609_v9  ;;  %v608_v11 = vpack.c.bf16 %v426_v10, %v425_v8 }
 0x12a   : > { %450 = vst [vmem:[%s215_s11 + $0xc] sm:$0xff] %v608_v11 }
 0x12c   : > { %v599_v14 = vld [vmem:[%s215_s11 + $0x8] sm:$0xf] }
 0x12d   : > { %600 = vst [vmem:[%s461_s21 + $0x8] sm:$0xf] %v599_v14 }
 0x12e   : > { %v476_v12 = vld [vmem:[%s215_s11] sm:$0xff] }
 0x12f   : > { %v601_v15 = vld [vmem:[%s215_s11 + $0x14] sm:$0xf]  ;;  %477 = vst [vmem:[%s461_s21] sm:$0xff] %v476_v12 }
 0x130   : > { %602 = vst [vmem:[%s461_s21 + $0x20] sm:$0xf] %v601_v15 }
 0x131   : > { %v478_v13 = vld [vmem:[%s215_s11 + $0xc] sm:$0xff] }
 0x132   : > { %479 = vst [vmem:[%s461_s21 + $0x18] sm:$0xff] %v478_v13 }
 0x133 PF: > { %p10_p10 = scmp.ge.s32.totalorder %s757_s16, 4   ;;  %s818_s12 = smov %s711_s13 }
 0x134   : > { %s819_s13 = smov %s768_s19  ;;  %s820_s14 = smov %s757_s16 }
 0x135   :  { %12 = sbr.rel (!%p10_p10) target bundleno = 2 (0x2), region = 131 }

// kernel: pinwheel_forward.3
= control target key start
LH: loop header
LB: loop body
LE: loop exit
PB: predicated region body
PF: predicated region fallthrough
CT: control target
= control target key end

     0   :  { %s597_s12 = smov 0   ;;  %s599_s13 = smov 0   ;;  %s670_s0 = inlined_call_operand.vmem [shape: bf16[16,64], index: 0, kind: input, shape index: {}]   ;;  %s671_s1 = inlined_call_operand.vmem [shape: bf16[64,512], index: 1, kind: input, shape index: {}]   ;;  %s672_s2 = inlined_call_operand.vmem [shape: f32[16,1], index: 2, kind: input, shape index: {}]   ;;  %s673_s3 = inlined_call_operand.vmem [shape: f32[16,512], index: 3, kind: output, shape index: {}]  }
   0x1   :  { %s601_s14 = smov 0  }
   0x2 LB: > { %s466_s15 = sadd.s32 4294967295, %s574_s14   ;;  %s614_s16 = sadd.s32 1, %s574_s14   ;;  %s574_s14 = sphi %s601_s14, %s677_s14   ;;  %s570_s13 = sphi %s599_s13, %s676_s13   ;;  %s566_s12 = sphi %s597_s12, %s675_s12  }
   0x3   : > { %s38_s17 = ssub.s32 %s574_s14, %s614_s16  ;;  %s41_s18 = sadd.s32 1, %s570_s13 }
   0x4   : > { %p39_p0 = scmp.eq.s32.totalorder %s38_s17, 0  ;;  %p48_p1 = scmp.ne.s32.totalorder %s570_s13, %s566_s12 }
   0x5   : > { %p49_p2 = scmp.eq.s32.totalorder %s574_s14, 0  ;;  %p99_p3 = scmp.eq.s32.totalorder %s466_s15, 1 }
   0x6   : > { %s625_s19 = scalar_select %p39_p0, %s570_s13, %s41_s18  }
   0x7   : > { %p50_p4 = por %p49_p2, %p48_p1  ;;  %p627_p5 = por %p99_p3, %p48_p1 }
   0x8   : > { %p469_p6 = scmp.ge.s32.totalorder %s574_s14, 2 }
   0xa   : > { %127 = sbr.rel (%p469_p6) target bundleno = 25 (0x19), region = 24 }
  0x11   : > { %130 = sbr.rel (!%p50_p4) target bundleno = 25 (0x19), region = 28  ;;  %s132_s21 = sand.u32 (%p50_p4), 1, %s570_s13  }
  0x12   : > { %s495_s22 = sshll.u32 (%p50_p4), %s574_s14, 3  ;;  %s470_s23 = sshll.u32 (%p50_p4), %s132_s21, 6 }
  0x13   : > { %s137_s26 = scalar_lea.vmem (%p50_p4), %s671_s1, %s495_s22  ;;  %s134_s27 = scalar_lea.vmem (%p50_p4), [#allocation2], %s470_s23 }
  0x14   : > { %v179_v0 = vld [vmem:[%s137_s26] sm:$0xff] (%p50_p4)  ;;  %v181_v1 = vld [vmem:[%s137_s26 + $0x10] sm:$0xff] (%p50_p4) }
  0x15   : > { %v183_v2 = vld [vmem:[%s137_s26 + $0x20] sm:$0xff] (%p50_p4)  ;;  %180 = vst [vmem:[%s134_s27] sm:$0xff] (%p50_p4), %v179_v0  ;;  %182 = vst [vmem:[%s134_s27 + $0x8] sm:$0xff] (%p50_p4), %v181_v1  ;;  %v185_v3 = vld [vmem:[%s137_s26 + $0x30] sm:$0xff] (%p50_p4) }
  0x16   : > { %184 = vst [vmem:[%s134_s27 + $0x10] sm:$0xff] (%p50_p4), %v183_v2  ;;  %v187_v4 = vld [vmem:[%s137_s26 + $0x40] sm:$0xff] (%p50_p4)  ;;  %v189_v5 = vld [vmem:[%s137_s26 + $0x50] sm:$0xff] (%p50_p4)  ;;  %186 = vst [vmem:[%s134_s27 + $0x18] sm:$0xff] (%p50_p4), %v185_v3 }
  0x17   : > { %188 = vst [vmem:[%s134_s27 + $0x20] sm:$0xff] (%p50_p4), %v187_v4  ;;  %190 = vst [vmem:[%s134_s27 + $0x28] sm:$0xff] (%p50_p4), %v189_v5  ;;  %v191_v6 = vld [vmem:[%s137_s26 + $0x60] sm:$0xff] (%p50_p4)  ;;  %v193_v7 = vld [vmem:[%s137_s26 + $0x70] sm:$0xff] (%p50_p4) }
  0x18   : > { %192 = vst [vmem:[%s134_s27 + $0x30] sm:$0xff] %v191_v6  ;;  %194 = vst [vmem:[%s134_s27 + $0x38] sm:$0xff] %v193_v7 }
  0x19 PF: > { %p473_p7 = scmp.ge.s32.totalorder %s574_s14, 1  ;;  %p199_p8 = scmp.lt.s32.totalorder %s574_s14, 3 }
  0x1b   : > { %p200_p9 = pnand %p473_p7, %p199_p8 }
  0x1c   : > { %s206_s28 = sand.u32 (!%p200_p9), 1, %s566_s12   ;;  %v576_v8 = vmov (!%p200_p9), 0   ;;  %v241_v9 = vld [vmem:[%s672_s2] sm:$0xff] (!%p200_p9)  ;;  %v242_v10 = vld [vmem:[%s672_s2 + $0x8] sm:$0xff] (!%p200_p9)  ;;  %vm298_vm0 = vcmask (!%p200_p9), 523264  }
  0x1d   : > { %203 = sbr.rel (%p200_p9) target bundleno = 302 (0x12e), region = 66  ;;  %s474_s29 = sshll.u32 (!%p200_p9), %s206_s28, 6  ;;  %334 = vmatprep.mubr.bf16.mxu0 (!%p200_p9), %v576_v8  ;;  %522 = vset.pattern.permute.xlu0 (!%p200_p9), %v576_v8  ;;  %v535_v19 = vld [vmem:[%s670_s0] sm:$0xff] (!%p200_p9)  }
  0x1e   : > { %245 = vperm.xlu0 (!%p200_p9), %522, %v241_v9   ;;  %s208_s7 = scalar_lea.vmem (!%p200_p9), [#allocation2], %s474_s29  ;;  %s475_s10 = sshll.u32 (!%p200_p9), %s206_s28, 5 }
  0x1f   : > { %v523_v11 = vld [vmem:[%s208_s7 + $0x4] ss:$8 sps:$4 sm:$0xff] (!%p200_p9)   ;;  %v525_v12 = vld [vmem:[%s208_s7] ss:$8 sps:$4 sm:$0xff] (!%p200_p9)   ;;  %v526_v13 = vld [vmem:[%s208_s7 + $0x14] ss:$8 sps:$4 sm:$0xff] (!%p200_p9)  }
  0x20   : > { %302 = vmatprep.subr.bf16.mxu0 (!%p200_p9), %v523_v11  ;;  %v528_v14 = vld [vmem:[%s208_s7 + $0x10] ss:$8 sps:$4 sm:$0xff] (!%p200_p9)   ;;  %v529_v15 = vld [vmem:[%s208_s7 + $0x24] ss:$8 sps:$4 sm:$0xff] (!%p200_p9)   ;;  %v531_v16 = vld [vmem:[%s208_s7 + $0x20] ss:$8 sps:$4 sm:$0xff] (!%p200_p9)  }
  0x21   : > { %303 = vmatpush1.bf16.msra.mxu0 (!%p200_p9), %v525_v12  ;;  %v532_v17 = vld [vmem:[%s208_s7 + $0x34] ss:$8 sps:$4 sm:$0xff] (!%p200_p9)   ;;  %v534_v18 = vld [vmem:[%s208_s7 + $0x30] ss:$8 sps:$4 sm:$0xff] (!%p200_p9)   ;;  %s227_s11 = scalar_lea.vmem (!%p200_p9), [#allocation3], %s475_s10 }
  0x22   : > { %250 = vperm.xlu0 (!%p200_p9), %522, %v242_v10   ;;  %304 = vmatprep.subr.bf16.mxu0 (!%p200_p9), %v526_v13 }
  0x24   : > { %s496_s12 = sshll.u32 (%p627_p5), %s466_s15, 4 }
  0x25   : > { %305 = vmatpush1.bf16.msra.mxu0 %v528_v14  ;;  %s386_s21 = scalar_lea.vmem (%p627_p5), %s673_s3, %s496_s12 }
  0x26   : > { %306 = vmatprep.subr.bf16.mxu0 %v529_v15 }
  0x29   : > { %307 = vmatpush1.bf16.msra.mxu0 %v531_v16 }
  0x2a   : > { %308 = vmatprep.subr.bf16.mxu0 %v532_v17 }
  0x2d   : > { %309 = vmatpush1.bf16.msra.mxu0 %v534_v18 }
  0x30   : > { %485 = vmatmul.mubr.msk.bf16.vlgmr.msra.gmra.mrb[0].mxu0 %vm298_vm0, %v535_v19 }
  0x9d   : > { %v246_v20 = vpop.permute.xlu0 %245 }
  0xa1   : > { %v251_v24 = vpop.permute.xlu0 %250 }
 0x103   : > { %v336_v21 = vpop.f32.mrb[0].mxu0 }
 0x104   : > { %v337_v22 = vadd.f32 %v336_v21, %v246_v20  ;;  %v338_v23 = vpop.f32.mrb[1].mxu0 }
 0x105   : > { %v339_v25 = vadd.f32 %v338_v23, %v246_v20  ;;  %v340_v26 = vpop.f32.mrb[2].mxu0 }
 0x106   : > { %v486_v27 = vmul.f32 -1.442695, %v337_v22  ;;  %v341_v28 = vadd.f32 %v340_v26, %v251_v24  ;;  %v342_v29 = vpop.f32.mrb[3].mxu0 }
 0x107   : > { %v487_v30 = vmul.f32 -1.442695, %v339_v25  ;;  %v343_v31 = vadd.f32 %v342_v29, %v251_v24 }
 0x108   : > { %536 = vpow2.f32 %v486_v27  ;;  %v488_v32 = vmul.f32 -1.442695, %v341_v28 }
 0x109   : > { %538 = vpow2.f32 %v487_v30  ;;  %v489_v33 = vmul.f32 -1.442695, %v343_v31 }
 0x10a   : > { %540 = vpow2.f32 %v488_v32 }
 0x10b   : > { %542 = vpow2.f32 %v489_v33 }
 0x112   : > { %v537_v34 = vpop.eup %536 }
 0x113   : > { %v539_v35 = vpop.eup %538  ;;  %v357_v36 = vadd.f32 1.0, %v537_v34 }
 0x114   : > { %v541_v37 = vpop.eup %540  ;;  %v358_v38 = vadd.f32 1.0, %v539_v35 }
 0x115   : > { %v543_v39 = vpop.eup %542  ;;  %544 = vrcp.f32 %v357_v36  ;;  %v359_v40 = vadd.f32 1.0, %v541_v37 }
 0x116   : > { %546 = vrcp.f32 %v358_v38  ;;  %v360_v41 = vadd.f32 1.0, %v543_v39 }
 0x117   : > { %548 = vrcp.f32 %v359_v40 }
 0x118   : > { %550 = vrcp.f32 %v360_v41 }
 0x11f   : > { %v545_v42 = vpop.eup %544  ;;  %383 = sbr.rel (!%p627_p5) target bundleno = 302 (0x12e), region = 74 }
 0x120   : > { %v547_v43 = vpop.eup %546  ;;  %v369_v44 = vmul.f32 %v545_v42, %v337_v22 }
 0x121   : > { %v549_v45 = vpop.eup %548  ;;  %v370_v46 = vmul.f32 %v547_v43, %v339_v25 }
 0x122   : > { %v551_v47 = vpop.eup %550  ;;  %373 = vst [vmem:[%s227_s11] sm:$0xff] %v369_v44  ;;  %v371_v48 = vmul.f32 %v549_v45, %v341_v28 }
 0x123   : > { %374 = vst [vmem:[%s227_s11 + $0x8] sm:$0xff] %v370_v46  ;;  %v372_v49 = vmul.f32 %v551_v47, %v343_v31 }
 0x124   : > { %375 = vst [vmem:[%s227_s11 + $0x10] sm:$0xff] %v371_v48 }
 0x125   : > { %376 = vst [vmem:[%s227_s11 + $0x18] sm:$0xff] %v372_v49 }
 0x129   : > { %v399_v50 = vld [vmem:[%s227_s11] sm:$0xff] }
 0x12a   : > { %v401_v51 = vld [vmem:[%s227_s11 + $0x8] sm:$0xff]  ;;  %400 = vst [vmem:[%s386_s21] sm:$0xff] %v399_v50 }
 0x12b   : > { %v403_v52 = vld [vmem:[%s227_s11 + $0x10] sm:$0xff]  ;;  %402 = vst [vmem:[%s386_s21 + $0x8] sm:$0xff] %v401_v51 }
 0x12c   : > { %v405_v53 = vld [vmem:[%s227_s11 + $0x18] sm:$0xff]  ;;  %404 = vst [vmem:[%s386_s21 + $0x20] sm:$0xff] %v403_v52 }
 0x12d   : > { %406 = vst [vmem:[%s386_s21 + $0x28] sm:$0xff] %v405_v53 }
 0x12e PF: > { %p10_p10 = scmp.ge.s32.totalorder %s614_s16, 4   ;;  %s675_s12 = smov %s570_s13 }
 0x12f   : > { %s676_s13 = smov %s625_s19  ;;  %s677_s14 = smov %s614_s16 }
 0x130   :  { %12 = sbr.rel (!%p10_p10) target bundleno = 2 (0x2), region = 128 }

</bundles_post_ra>
